<compile_context>
chip_gen: v7x
topology: tpu7x:2x2x1
jax: 0.10.0
libtpu: 0.0.40
codegen_flags: <defaults>
</compile_context>

<pallas_src>
import math

import jax
import jax.numpy as jnp
from jax.experimental import pallas as pl
from jax.experimental.pallas import tpu as pltpu

_LOG2 = math.log(2.0)


# --------------------------------------------------------------------------- #
# Tile sizing helpers
# --------------------------------------------------------------------------- #
def _round_up(x, m):
    return ((x + m - 1) // m) * m


def _sublane_pack(itemsize):
    """Rows per packed sublane group: 8 for f32, 16 for bf16, 32 for int8/fp8."""
    return max(8, (8 * 4) // int(itemsize))


def _vmem_limits():
    """(vmem_limit_bytes, tile_budget_bytes) derived per TPU generation."""
    phys = None
    try:
        info = pltpu.get_tpu_info()
        phys = getattr(info, "vmem_capacity_bytes", None)
    except Exception:
        phys = None
    if not phys:
        phys = 64 << 20                      # conservative: v7x per-TC VMEM
    limit = min((int(phys) * 3) // 4, 96 << 20)   # 48 MiB on v7x, 96 MiB on v5e/v6e
    budget = limit // 2                      # headroom for f32 temps / compiler scratch
    return int(limit), int(budget)


def _choose_tb(B, D, itemsize, budget_bytes, pack):
    """Largest batch tile (multiple of `pack`) fitting the VMEM budget, with >=2
    grid steps when the batch allows (keeps both v7x TensorCores busy)."""
    # double-buffered z-in + y-out  +  ~4 f32 elementwise temporaries per row
    per_row = D * (4 * itemsize + 4 * 4)
    tb_max = max(pack, ((budget_bytes // per_row) // pack) * pack)
    bp = _round_up(B, pack)
    tb = min(tb_max, bp)
    if bp >= 2 * pack:                       # prefer at least 2 grid steps
        tb = min(tb, max(pack, ((bp // 2) // pack) * pack))
    return max(pack, (tb // pack) * pack)


# --------------------------------------------------------------------------- #
# Kernel
# --------------------------------------------------------------------------- #
def _make_support_kernel(mode, c=0.0, b=1.0, d=None):
    """Kernel body for one support transform (mode fixed at trace time).

    Refs:
      z_ref      : (tb, D)      input sample block
      lp_ref     : (1, 1, tb)   lane-dense log_prob block
      y_ref      : (tb, D)      transformed output block
      lp_out_ref : (1, 1, tb)   lane-dense updated log_prob block
    """
    if mode == "r-bounded":
        log_b_times_d = float(d) * math.log(float(b))   # hoisted scalar

    def kernel(z_ref, lp_ref, y_ref, lp_out_ref):
        z = z_ref[...]                                   # (tb, D), native dtype
        if mode == "r_plus":
            y_ref[...] = jnp.exp(z).astype(y_ref.dtype)  # EUP
            ldj = jnp.sum(z.astype(jnp.float32), axis=-1)            # (tb,)
        elif mode == "r-bounded":
            y_ref[...] = (c + b * jnp.tanh(z)).astype(y_ref.dtype)   # EUP
            zf = z.astype(jnp.float32)
            az = jnp.abs(zf)
            # stable: log(1 - tanh(z)^2) = 2*(log 2 - |z| - log1p(exp(-2|z|)))
            term = 2.0 * (_LOG2 - az - jnp.log1p(jnp.exp(-2.0 * az)))
            ldj = log_b_times_d + jnp.sum(term, axis=-1)             # (tb,)
        else:
            raise ValueError("Transform not supported.")
        # Fused, lane-dense log_prob update (sublane->lane relayout goes to idle XLU).
        lp_new = lp_ref[...].astype(jnp.float32) - ldj[None, None, :]
        lp_out_ref[...] = lp_new.astype(lp_out_ref.dtype)

    return kernel


# --------------------------------------------------------------------------- #
# Wrapper (== SupportTransformLayer.forward)
# --------------------------------------------------------------------------- #
def support_transform_forward(z, log_prob, *, support_transform, bounds=None,
                              tb=None):
    """Pallas implementation of SupportTransformLayer.forward(z, log_prob)."""
    if support_transform == "r":
        # Identity transform, zero log-det-Jacobian: no kernel, no HBM traffic.
        return z, log_prob

    B, D = z.shape
    c, b = (bounds if bounds is not None else (0.0, 1.0))
    itemsize = jnp.dtype(z.dtype).itemsize
    pack = _sublane_pack(itemsize)
    vmem_limit, vmem_budget = _vmem_limits()

    if tb is None:
        tb = _choose_tb(B, D, itemsize, vmem_budget, pack)
    tb = max(pack, (int(tb) // pack) * pack)

    # Pad batch to a multiple of tb (keeps the fast tiled path for awkward B).
    Bp = _round_up(B, tb)
    if Bp != B:
        z_p = jnp.pad(z, ((0, Bp - B), (0, 0)))
        lp_p = jnp.pad(log_prob, (0, Bp - B))
    else:
        z_p, lp_p = z, log_prob
    G = Bp // tb
    lp_blk = lp_p.reshape(G, 1, tb)          # lane-dense log_prob blocks

    kernel = _make_support_kernel(support_transform, c=c, b=b, d=D)

    n_trans = 1 if support_transform == "r_plus" else 3
    lp_itemsize = jnp.dtype(log_prob.dtype).itemsize
    cost = pl.CostEstimate(
        flops=6 * Bp * D,
        transcendentals=n_trans * Bp * D,
        bytes_accessed=2 * Bp * D * itemsize + 2 * Bp * lp_itemsize,
    )

    y, lp_out = pl.pallas_call(
        kernel,
        out_shape=(
            jax.ShapeDtypeStruct((Bp, D), z.dtype),
            jax.ShapeDtypeStruct((G, 1, tb), log_prob.dtype),
        ),
        grid_spec=pltpu.PrefetchScalarGridSpec(
            num_scalar_prefetch=0,
            grid=(G,),
            in_specs=[
                pl.BlockSpec((tb, D), lambda i: (i, 0)),
                pl.BlockSpec((1, 1, tb), lambda i: (i, 0, 0)),
            ],
            out_specs=[
                pl.BlockSpec((tb, D), lambda i: (i, 0)),
                pl.BlockSpec((1, 1, tb), lambda i: (i, 0, 0)),
            ],
        ),
        compiler_params=pltpu.CompilerParams(
            dimension_semantics=("parallel",),
            vmem_limit_bytes=vmem_limit,
        ),
        cost_estimate=cost,
    )(z_p, lp_blk)

    y = y[:B] if Bp != B else y
    lp_out = lp_out.reshape(Bp)[:B]
    return y, lp_out


# --------------------------------------------------------------------------- #
# Pure-JAX reference (matches the PyTorch module semantics)
# --------------------------------------------------------------------------- #
def _reference_forward(z, log_prob, support_transform, bounds=None):
    if support_transform == "r":
        return z, log_prob
    if support_transform == "r_plus":
        return jnp.exp(z), log_prob - jnp.sum(z, axis=-1)
    if support_transform == "r-bounded":
        c, b = bounds
        t = jnp.tanh(z)
        ldj = jnp.sum(jnp.log(b) + jnp.log1p(-t * t), axis=-1)
        return c + b * t, log_prob - ldj
    raise ValueError("Transform not supported.")


# --------------------------------------------------------------------------- #
# Self-test
# --------------------------------------------------------------------------- #
if __name__ == "__main__":
    key = jax.random.PRNGKey(0)
    kz, kl = jax.random.split(key)
    ok = True

    def check(B, D, mode, bounds, tb=None):
        z = jax.random.normal(kz, (B, D), dtype=jnp.float32)
        lp = jax.random.normal(kl, (B,), dtype=jnp.float32)
        y, lpo = support_transform_forward(
            z, lp, support_transform=mode, bounds=bounds, tb=tb)
        jax.block_until_ready((y, lpo))
        y_ref, lp_ref = _reference_forward(z, lp, mode, bounds)
        a = bool(jnp.allclose(y, y_ref, atol=1e-5, rtol=1e-5))
        c = bool(jnp.allclose(lpo, lp_ref, atol=1e-4, rtol=1e-4))
        return a and c

    cases = [
        (16, 128, "r", None, None),                 # identity fast path
        (16, 128, "r_plus", None, None),            # auto tb (grid split for megacore)
        (16, 128, "r-bounded", (0.5, 2.0), None),
        (64, 128, "r_plus", None, 8),               # forced small tile -> grid of 8
        (64, 128, "r-bounded", (0.5, 2.0), 8),
        (12, 128, "r-bounded", (0.5, 2.0), None),   # B not a multiple of 8 -> padded
    ]
    for B, D, mode, bounds, tb in cases:
        ok &= check(B, D, mode, bounds, tb=tb)

    print("KERNEL_OK" if ok else "KERNEL_MISMATCH")
</pallas_src>

<mosaic_0001>
module attributes {stable_mosaic.version = 11 : i64} {
  func.func @kernel(%arg0: i32, %arg1: memref<8x128xf32, #tpu.memory_space<vmem>>, %arg2: memref<1x1x8xf32, #tpu.memory_space<vmem>>, %arg3: memref<8x128xf32, #tpu.memory_space<vmem>>, %arg4: memref<1x1x8xf32, #tpu.memory_space<vmem>>) attributes {dimension_semantics = [#tpu.dimension_semantics<parallel>], iteration_bounds = array<i64: 2>, scalar_prefetch = 0 : i64, scratch_operands = 0 : i64, tpu.core_type = #tpu.core_type<tc>, window_params = [{transform_indices = @transform_0, window_bounds = array<i64: 8, 128>}, {transform_indices = @transform_1, window_bounds = array<i64: 1, 1, 8>}, {transform_indices = @transform_2, window_bounds = array<i64: 8, 128>}, {transform_indices = @transform_3, window_bounds = array<i64: 1, 1, 8>}]} {
    %c0 = arith.constant 0 : index
    %c0_0 = arith.constant 0 : index
    %0 = vector.load %arg1[%c0, %c0_0] : memref<8x128xf32, #tpu.memory_space<vmem>>, vector<8x128xf32>
    %1 = math.exp %0 : vector<8x128xf32>
    %c0_1 = arith.constant 0 : index
    %c0_2 = arith.constant 0 : index
    %2 = vector.load %arg3[%c0_1, %c0_2] : memref<8x128xf32, #tpu.memory_space<vmem>>, vector<8x128xf32>
    tpu.vector_store %arg3[%c0_1, %c0_2], %1 {strides = array<i32>} : memref<8x128xf32, #tpu.memory_space<vmem>>, vector<8x128xf32>,
    %cst = arith.constant dense<0.000000e+00> : vector<8xf32>
    %3 = vector.multi_reduction <add>, %0, %cst [1] : vector<8x128xf32> to vector<8xf32>
    %c0_3 = arith.constant 0 : index
    %c0_4 = arith.constant 0 : index
    %c0_5 = arith.constant 0 : index
    %4 = vector.load %arg2[%c0_3, %c0_4, %c0_5] : memref<1x1x8xf32, #tpu.memory_space<vmem>>, vector<1x1x8xf32>
    %5 = vector.shape_cast %3 : vector<8xf32> to vector<1x1x8xf32>
    %6 = arith.subf %4, %5 : vector<1x1x8xf32>
    %c0_6 = arith.constant 0 : index
    %c0_7 = arith.constant 0 : index
    %c0_8 = arith.constant 0 : index
    %7 = vector.load %arg4[%c0_6, %c0_7, %c0_8] : memref<1x1x8xf32, #tpu.memory_space<vmem>>, vector<1x1x8xf32>
    tpu.vector_store %arg4[%c0_6, %c0_7, %c0_8], %6 {strides = array<i32>} : memref<1x1x8xf32, #tpu.memory_space<vmem>>, vector<1x1x8xf32>,
    return
  }
  func.func @transform_0(%arg0: i32) -> (i32, i32) {
    %c0_i32 = arith.constant 0 : i32
    %c0_i32_0 = arith.constant 0 : i32
    return %arg0, %c0_i32 : i32, i32
  }
  func.func @transform_1(%arg0: i32) -> (i32, i32, i32) {
    %c0_i32 = arith.constant 0 : i32
    %c0_i32_0 = arith.constant 0 : i32
    %c0_i32_1 = arith.constant 0 : i32
    return %arg0, %c0_i32, %c0_i32_0 : i32, i32, i32
  }
  func.func @transform_2(%arg0: i32) -> (i32, i32) {
    %c0_i32 = arith.constant 0 : i32
    %c0_i32_0 = arith.constant 0 : i32
    return %arg0, %c0_i32 : i32, i32
  }
  func.func @transform_3(%arg0: i32) -> (i32, i32, i32) {
    %c0_i32 = arith.constant 0 : i32
    %c0_i32_0 = arith.constant 0 : i32
    %c0_i32_1 = arith.constant 0 : i32
    return %arg0, %c0_i32, %c0_i32_0 : i32, i32, i32
  }
}

</mosaic_0001>

<bundles_post_ra>
// kernel: tpu_custom_call.1
= control target key start
LH: loop header
LB: loop body
LE: loop exit
PB: predicated region body
PF: predicated region fallthrough
CT: control target
= control target key end

     0   :  { %9 = vsyncpa [#allocation3], 0  ;;  %s911_s0 = inlined_call_operand.hbm [shape: f32[16,128], index: 0, kind: input, shape index: {}]   ;;  %s912_s1 = inlined_call_operand.vmem [shape: f32[2,1,8], index: 1, kind: input, shape index: {}]   ;;  %s913_s2 = inlined_call_operand.hbm [shape: f32[16,128], index: 2, kind: output, shape index: {0}]   ;;  %s914_s3 = inlined_call_operand.hbm [shape: f32[2,1,8], index: 3, kind: output, shape index: {1}]  }
   0x1   :  { %11 = vsyncpa [#allocation3 + $0x1], 0 }
   0x2   :  { %12 = vsyncpa [#allocation4], 0 }
   0x3   :  { %14 = vsyncpa [#allocation4 + $0x1], 0 }
   0x4   :  { %15 = vsyncpa [#allocation7], 0 }
   0x5   :  { %17 = vsyncpa [#allocation7 + $0x1], 0  ;;  %s688_s12 = smov 0   ;;  %s690_s13 = smov 0  }
   0x6   :  { %s692_s14 = smov 0   ;;  %s694_s15 = smov 0  }
   0x7 LB: > { %s709_s16 = sadd.s32 4294967295, %s661_s15   ;;  %s464_s17 = sadd.s32 4294967294, %s661_s15   ;;  %s661_s15 = sphi %s694_s15, %s929_s15   ;;  %s657_s14 = sphi %s692_s14, %s928_s14   ;;  %s653_s13 = sphi %s690_s13, %s927_s13   ;;  %s649_s12 = sphi %s688_s12, %s926_s12  }
   0x8   : > { %s713_s18 = sadd.s32 1, %s661_s15   ;;  %s30_s19 = sadd.s32 1, %s657_s14 }
   0x9   : > { %s27_s20 = ssub.s32 %s661_s15, %s713_s18  ;;  %p37_p0 = scmp.ne.s32.totalorder %s657_s14, %s653_s13 }
   0xa   : > { %p28_p1 = scmp.eq.s32.totalorder %s27_s20, 0  ;;  %p38_p2 = scmp.eq.s32.totalorder %s661_s15, 0 }
   0xb   : > { %p43_p3 = scmp.ne.s32.totalorder %s653_s13, %s649_s12  ;;  %p44_p4 = scmp.eq.s32.totalorder %s709_s16, 0 }
   0xc   : > { %s725_s21 = scalar_select %p28_p1, %s657_s14, %s30_s19  }
   0xd   : > { %p727_p5 = por %p38_p2, %p37_p0  ;;  %p731_p6 = por %p44_p4, %p43_p3 }
   0xe   : > { %p93_p7 = scmp.eq.s32.totalorder %s709_s16, 1  ;;  %p99_p8 = scmp.eq.s32.totalorder %s464_s17, 1 }
   0xf   : > { %p494_p10 = scmp.lt.s32.totalorder %s661_s15, 2  ;;  %s145_s26 = sand.u32 1, %s657_s14  }
  0x10   : > { %p738_p11 = por %p93_p7, %p37_p0  ;;  %p742_p12 = por %p99_p8, %p43_p3 }
  0x11   : > { %s468_s27 = sshll.u32 %s661_s15, 7  ;;  %s467_s28 = sshll.u32 %s145_s26, 3 }
  0x12   : > { %s918_s24 = scalar_select %p738_p11, 1, 0 }
  0x13   : > { %s919_s25 = scalar_select %p742_p12, 1, 0 }
  0x14   : > { %s751_s4 = scalar_lea.hbm %s911_s0, %s468_s27  ;;  %s149_s5 = scalar_lea.vmem [#allocation2], %s467_s28 }
  0x15   : > { %s156_s6 = sshll.u32 %s149_s5, 4  ;;  %p755_p13 = pnand %p494_p10, %p727_p5  ;;  %s759_s6 = int_to_ptr.vmem [resolvable:$true] %s156_s6 }
  0x16   : > { %s146_s8 = scalar_lea.sflag [#allocation3], %s145_s26  ;;  %s533_s9 = scalar_lea.hbm %s751_s4, 128 }
  0x17   : > { %p534_p2 = scmp.ne.s32.totalorder %s751_s4, %s533_s9  ;;  %p535_p3 = pneg %p755_p13 }
  0x18   : > { %s538_s17 = scalar_lea.hbm %s911_s0, 256  ;;  %p539_p5 = scmp.lt.u32.totalorder %s751_s4, %s911_s0 }
  0x19   : > { %p536_p4 = pnand %p535_p3, %p534_p2  ;;  %p540_p8 = scmp.lt.u32.totalorder %s538_s17, %s533_s9 }
  0x1a   : > { %p542_p9 = scmp.lt.u32.totalorder %s533_s9, %s751_s4 }
  0x1b   : > { %p537_p7 = pneg %p536_p4  ;;  %p541_p10 = por %p540_p8, %p539_p5 }
  0x1d   : > { %p543_p0 = por %p542_p9, %p541_p10 }
  0x1f   : > { %p544_p1 = pnand %p543_p0, %p537_p7 }
  0x21   : > { %547 = shalt.err (!%p544_p1)
}
  0x22   : > { %s548_s22 = scalar_lea.vmem %s759_s6, 128  ;;  %s663_s26 = smov [#allocation2]  }
  0x23   : > { %p549_p2 = scmp.ne.s32.totalorder %s759_s6, %s548_s22  ;;  %s553_s27 = sshll.u32 %s663_s26, 4  ;;  %s554_s27 = int_to_ptr.vmem [resolvable:$false] %s553_s27 }
  0x24   : > { %s555_s28 = scalar_lea.vmem %s554_s27, 256  ;;  %p556_p11 = scmp.lt.s32.totalorder %s759_s6, %s554_s27 }
  0x25   : > { %p551_p4 = pnand %p549_p2, %p535_p3  ;;  %p557_p5 = scmp.lt.s32.totalorder %s555_s28, %s548_s22 }
  0x27   : > { %p552_p12 = pneg %p551_p4  ;;  %p558_p8 = por %p557_p5, %p556_p11 }
  0x29   : > { %p559_p9 = pnand %p558_p8, %p552_p12 }
  0x2b   : > { %562 = shalt.err (!%p559_p9)
}
  0x2c   : > { %486 = dma.hbm_to_vmem [thread:$0]  (!%p755_p13), %s751_s4, 128, %s759_s6, %s146_s8  }
  0x2d   : > { %p921_p0 = scmp.lt.s32.totalorder %s661_s15, 3  ;;  %p922_p1 = scmp.ge.s32.totalorder %s661_s15, 1 }
  0x2f   : > { %p168_p3 = pnand %p922_p1, %p921_p0 }
  0x30   : > { %s793_s29 = sand.u32 (!%p168_p3), 1, %s653_s13  }
  0x31   : > { %171 = sbr.rel (%p168_p3) target bundleno = 363 (0x16b), region = 28  ;;  %s470_s30 = sshll.u32 (!%p168_p3), %s793_s29, 3 }
  0x32   : > { %s174_s5 = scalar_lea.sflag (!%p168_p3), [#allocation3], %s793_s29  ;;  %s177_s7 = scalar_lea.vmem (!%p168_p3), [#allocation2], %s470_s30 }
  0x38   : > { %636 = dma.done.wait (%p731_p6), %s174_s5, 128  }
  0x39   : > { %638 = vsyncadd (%p731_p6), %s174_s5, 4294967168  ;;  %v210_v0 = vld [vmem:[%s177_s7] sm:$0xff]  ;;  %v664_v1 = vmov 0   ;;  %v218_v2 = vlaneseq  ;;  %v665_v6 = vmov 1966171168   ;;  %s200_s23 = scalar_lea.vmem [#allocation5], %s470_s30 }
  0x3a   : > { %214 = vadd.xlane.f32.xlu0 %v210_v0  ;;  %v255_v7 = vunpack.c.l.s4 %v665_v6  ;;  %v211_v29 = vmul.f32 1.442695, %v210_v0  ;;  %s473_s4 = sshll.u32 %s709_s16, 7  ;;  %s344_s6 = sshll.u32 %s200_s23, 4  ;;  %s345_s6 = int_to_ptr.vmem [resolvable:$true] %s344_s6 }
  0x3b   : > { %530 = vset.pattern.permute.xlu0 %v664_v1  ;;  %v803_v3 = vshrl.u32 %v218_v2, 7  ;;  %v805_v4 = vand.u32 127, %v218_v2  ;;  %s832_s10 = scalar_lea.hbm %s913_s2, %s473_s4  ;;  %s327_s11 = scalar_lea.sflag [#allocation4], %s793_s29 }
  0x3c   : > { %v256_v8 = vunpack.c.0.s8 %v255_v7  ;;  %531 = vpow2.f32 %v211_v29  ;;  %s563_s17 = scalar_lea.vmem %s345_s6, 128  ;;  %p923_p11 = scmp.ne.s32.totalorder %s918_s24, 0 }
  0x3d   : > { %v306_v5 = vsub.s32 %v805_v4, %v803_v3  ;;  %v220_v9 = vsub.s32 0, %v803_v3  ;;  %v224_v10 = vsub.s32 1, %v803_v3  ;;  %v228_v11 = vsub.s32 2, %v803_v3  ;;  %p564_p6 = scmp.ne.s32.totalorder %s345_s6, %s563_s17  ;;  %s666_s19 = smov [#allocation5]  }
  0x3e   : > { %v232_v12 = vsub.s32 3, %v803_v3  ;;  %v236_v13 = vsub.s32 4, %v803_v3  ;;  %v240_v14 = vsub.s32 5, %v803_v3  ;;  %v244_v15 = vsub.s32 6, %v803_v3  ;;  %s567_s20 = sshll.u32 %s666_s19, 4  ;;  %s568_s20 = int_to_ptr.vmem [resolvable:$false] %s567_s20 }
  0x3f   : > { %v248_v16 = vsub.s32 7, %v803_v3  ;;  %v818_v18 = vsub.s32 %v256_v8, %v803_v3  ;;  %p565_p12 = pnand %p564_p6, %p923_p11  ;;  %s569_s22 = scalar_lea.vmem %s568_s20, 256 }
  0x40   : > { %p570_p7 = scmp.lt.s32.totalorder %s345_s6, %s568_s20  ;;  %p571_p10 = scmp.lt.s32.totalorder %s569_s22, %s563_s17 }
  0x41   : > { %p566_p13 = pneg %p565_p12 }
  0x42   : > { %p572_p2 = por %p571_p10, %p570_p7 }
  0x44   : > { %p573_p4 = pnand %p572_p2, %p566_p13 }
  0x46   : > { %v532_v41 = vpop.eup %531 }
  0x47   : > { %213 = vst [vmem:[%s200_s23] sm:$0xff] %v532_v41 }
  0xc7   : > { %v215_v17 = vpop.xlane.xlu0 %214 }
  0xc8   : > { %v221_v19 = vrot.slane %v215_v17, %v220_v9  ;;  %v225_v20 = vrot.slane %v215_v17, %v224_v10  ;;  %v229_v21 = vrot.slane %v215_v17, %v228_v11  ;;  %v233_v22 = vrot.slane %v215_v17, %v232_v12 }
  0xc9   : > { %v237_v23 = vrot.slane %v215_v17, %v236_v13  ;;  %v241_v24 = vrot.slane %v215_v17, %v240_v14  ;;  %v245_v25 = vrot.slane %v215_v17, %v244_v15  ;;  %v249_v26 = vrot.slane %v215_v17, %v248_v16 }
  0xca   : > { %v250_v27 = vcombine.low %v221_v19, %v225_v20  ;;  %v251_v28 = vcombine.low %v229_v21, %v233_v22 }
  0xcb   : > { %v252_v30 = vcombine.low %v237_v23, %v241_v24  ;;  %v253_v31 = vcombine.low %v245_v25, %v249_v26 }
  0xcc   : > { %v260_v32 = vrot.slane %v250_v27, %v818_v18  ;;  %v267_v33 = vrot.slane %v251_v28, %v818_v18 }
  0xcd   : > { %v274_v34 = vrot.slane %v252_v30, %v818_v18  ;;  %v281_v35 = vrot.slane %v253_v31, %v818_v18 }
  0xce   : > { %v282_v36 = vcombine.low %v260_v32, %v267_v33 }
  0xcf   : > { %v283_v37 = vcombine.low %v274_v34, %v281_v35 }
  0xd0   : > { %v290_v38 = vrot.slane %v282_v36, %v818_v18 }
  0xd1   : > { %v297_v39 = vrot.slane %v283_v37, %v818_v18 }
  0xd3   : > { %v298_v40 = vcombine.low %v290_v38, %v297_v39 }
  0xd5   : > { %300 = vperm.xlu0 %530, %v298_v40  }
  0xd6   : > { %576 = shalt.err (!%p573_p4)
}
  0xd7   : > { %s577_s26 = scalar_lea.hbm %s832_s10, 128  ;;  %s581_s30 = scalar_lea.hbm %s913_s2, 256 }
  0xd8   : > { %p578_p5 = scmp.ne.s32.totalorder %s832_s10, %s577_s26  ;;  %p582_p0 = scmp.lt.u32.totalorder %s832_s10, %s913_s2 }
  0xd9   : > { %p583_p1 = scmp.lt.u32.totalorder %s581_s30, %s577_s26  ;;  %p585_p6 = scmp.lt.u32.totalorder %s577_s26, %s832_s10 }
  0xda   : > { %p579_p8 = pnand %p578_p5, %p923_p11 }
  0xdb   : > { %p584_p3 = por %p583_p1, %p582_p0 }
  0xdc   : > { %p580_p9 = pneg %p579_p8 }
  0xdd   : > { %p586_p12 = por %p585_p6, %p584_p3 }
  0xdf   : > { %p587_p13 = pnand %p586_p12, %p580_p9 }
  0xe1   : > { %590 = shalt.err (!%p587_p13)
}
  0xe2   : > { %479 = dma.vmem_to_hbm [thread:$0]  (%p923_p11), %s345_s6, 128, %s832_s10, %s327_s11   ;;  %vm324_vm0 = vcmask 57344  }
  0xe3   : > { %p207_p7 = scmp.lt.s32.totalorder %s709_s16, 1  ;;  %s474_s17 = sshll.u32 %s709_s16, 4 }
  0xe4   : > { %s206_s19 = scalar_lea.vmem [#allocation6], %s793_s29  ;;  %s867_s11 = scalar_lea.hbm %s914_s3, %s474_s17 }
  0xe5   : > { %s208_s23 = scalar_select %p207_p7, %s709_s16, 1 }
  0xe6   : > { %s357_s20 = sshll.u32 %s206_s19, 4  ;;  %s332_s22 = scalar_lea.sflag [#allocation7], %s793_s29  ;;  %s869_s20 = int_to_ptr.vmem [resolvable:$true] %s357_s20 }
  0xe7   : > { %s209_s9 = scalar_lea.vmem %s912_s1, %s208_s23  ;;  %s591_s26 = scalar_lea.vmem %s869_s20, 16 }
  0xe8   : > { %v216_v45 = vld [vmem:[%s209_s9] sm:$0x1]  ;;  %p592_p10 = scmp.ne.s32.totalorder %s869_s20, %s591_s26  ;;  %s667_s16 = smov [#allocation6]  }
  0xe9   : > { %s595_s27 = sshll.u32 %s667_s16, 4  ;;  %s596_s27 = int_to_ptr.vmem [resolvable:$false] %s595_s27 }
  0xea   : > { %p593_p2 = pnand %p592_p10, %p923_p11  ;;  %s597_s28 = scalar_lea.vmem %s596_s27, 32 }
  0xeb   : > { %p598_p5 = scmp.lt.s32.totalorder %s869_s20, %s596_s27  ;;  %p599_p8 = scmp.lt.s32.totalorder %s597_s28, %s591_s26 }
  0xec   : > { %p594_p4 = pneg %p593_p2 }
  0xed   : > { %p600_p9 = por %p599_p8, %p598_p5 }
  0xef   : > { %p601_p0 = pnand %p600_p9, %p594_p4 }
 0x154   : > { %v301_v42 = vpop.permute.xlu0 %300 }
 0x155   : > { %v307_v43 = vrot.slane %v301_v42, %v306_v5 }
 0x157   : > { %v314_v44 = vrot.slane %v307_v43, %v818_v18 }
 0x159   : > { %v321_v46 = vrot.slane %v314_v44, %v818_v18 }
 0x15b   : > { %v323_v47 = vsub.f32 %v216_v45, %v321_v46 }
 0x15d   : > { %325 = vst.msk [vmem:[%s206_s19] sm:$0x1] %vm324_vm0, %v323_v47 }
 0x15e   : > { %604 = shalt.err (!%p601_p0)
}
 0x15f   : > { %s605_s29 = scalar_lea.hbm %s867_s11, 16  ;;  %s609_s7 = scalar_lea.hbm %s914_s3, 32 }
 0x160   : > { %p606_p1 = scmp.ne.s32.totalorder %s867_s11, %s605_s29  ;;  %p610_p12 = scmp.lt.u32.totalorder %s867_s11, %s914_s3 }
 0x161   : > { %p611_p13 = scmp.lt.u32.totalorder %s609_s7, %s605_s29  ;;  %p613_p10 = scmp.lt.u32.totalorder %s605_s29, %s867_s11 }
 0x162   : > { %p607_p3 = pnand %p606_p1, %p923_p11 }
 0x163   : > { %p612_p7 = por %p611_p13, %p610_p12 }
 0x164   : > { %p608_p6 = pneg %p607_p3 }
 0x165   : > { %p614_p2 = por %p613_p10, %p612_p7 }
 0x167   : > { %p615_p4 = pnand %p614_p2, %p608_p6 }
 0x169   : > { %618 = shalt.err (!%p615_p4)
}
 0x16a   : > { %480 = dma.vmem_to_hbm [thread:$0]  (%p923_p11), %s869_s20, 16, %s867_s11, %s332_s22  }
 0x16b PF: > { %s369_s8 = sand.u32 1, %s649_s12   ;;  %p924_p5 = scmp.ne.s32.totalorder %s919_s25, 0 }
 0x16c   : > { %p925_p8 = scmp.ge.s32.totalorder %s661_s15, 2  ;;  %s370_s9 = scalar_lea.sflag [#allocation4], %s369_s8 }
 0x16e   : > { %p488_p9 = pnand %p925_p8, %p924_p5 }
 0x170   : > { %640 = dma.done.wait (!%p488_p9), %s370_s9, 128  }
 0x171   : > { %642 = vsyncadd (!%p488_p9), %s370_s9, 4294967168  ;;  %s379_s17 = scalar_lea.sflag [#allocation7], %s369_s8 }
 0x172   : > { %644 = dma.done.wait (!%p488_p9), %s379_s17, 16  }
 0x173   : > { %646 = vsyncadd (!%p488_p9), %s379_s17, 4294967280  ;;  %p20_p11 = scmp.ge.s32.totalorder %s713_s18, 4   ;;  %s926_s12 = smov %s653_s13 }
 0x174   : > { %s927_s13 = smov %s657_s14  ;;  %s928_s14 = smov %s725_s21 }
 0x175   : > { %s929_s15 = smov %s713_s18  ;;  %22 = sbr.rel (!%p20_p11) target bundleno = 7 (0x7), region = 93 }
 0x17c   :  { %383 = vsyncpa [#allocation3], 1 }
 0x17d   :  { %385 = vsyncpa [#allocation3 + $0x1], 1 }
 0x17e   :  { %386 = vsyncpa [#allocation4], 1 }
 0x17f   :  { %388 = vsyncpa [#allocation4 + $0x1], 1 }
 0x180   :  { %389 = vsyncpa [#allocation7], 1 }
 0x181   :  { %391 = vsyncpa [#allocation7 + $0x1], 1 }

</bundles_post_ra>
